<compile_context>
chip_gen: v6e
topology: v6e:2x2x1
jax: 0.10.0
libtpu: 0.0.40
codegen_flags: <defaults>
</compile_context>

<pallas_src>
import functools

import jax
import jax.numpy as jnp
from jax import lax
from jax.experimental import pallas as pl
from jax.experimental.pallas import tpu as pltpu


_VMEM_TILE_BUDGET = 20 * 1024 * 1024   # per-tile working-set budget (safe on v5e/v6e/v7x)
_VMEM_LIMIT_BYTES = 32 * 1024 * 1024   # explicit scoped-VMEM limit (>= v5e 16 MiB default)


def _cdiv(a, b):
    return -(-a // b)


def _round_up(n, m):
    return _cdiv(n, m) * m


def _choose_tiling(batch, tile_b, bytes_per_lane):
    """Pick (tile, grid, padded_batch): lane-aligned, VMEM-budgeted, >=2 steps on v7x."""
    bp128 = _round_up(max(batch, 1), 128)
    tile = max(128, _round_up(tile_b, 128))
    # Cap so double-buffered in/out blocks + f32 intermediates fit the VMEM budget.
    vmem_cap = max(128, (_VMEM_TILE_BUDGET // bytes_per_lane) // 128 * 128)
    tile = min(tile, vmem_cap)
    # v7x has 2 TensorCores: keep >=2 grid steps whenever there is more than one
    # 128-lane batch block so the "parallel" grid axis actually shards across cores.
    if bp128 > 128:
        tile = min(tile, _round_up(_cdiv(bp128, 2), 128))
    tile = min(tile, bp128)
    grid = _cdiv(bp128, tile)
    # Equalize tiles across the grid (multiples of 128) so blocks cover the padded batch
    # exactly: bounded padding waste, no ragged trailing block.
    tile = _cdiv(bp128 // 128, grid) * 128
    return tile, grid, tile * grid


@functools.partial(jax.jit, static_argnames=("tile_b", "operand_dtype"))
def mlp_forward(x, params, tile_b=4096, operand_dtype=jnp.bfloat16):
    """Fused MLP forward.

    x:      (B, input_size) activations (any float dtype).
    params: list of (W, b) with W in PyTorch layout (out_features, in_features).
    tile_b: preferred batch tile in lanes (rounded to a multiple of 128).
    operand_dtype: MXU operand dtype (None -> keep f32 operands). Accumulation,
        bias add and ReLU are always f32.
    """
    (w1, b1), (w2, b2), (w3, b3), (w4, b4) = params
    B, in_size = x.shape
    n1, n2, n3, n4 = w1.shape[0], w2.shape[0], w3.shape[0], w4.shape[0]
    out_dtype = x.dtype
    x_bytes = jnp.dtype(x.dtype).itemsize
    op_bytes = 4 if operand_dtype is None else jnp.dtype(operand_dtype).itemsize

    # ---- tiling: batch on lanes, padded only to 128-lane granularity -------------
    bytes_per_lane = (2 * in_size * x_bytes          # double-buffered x block
                      + 2 * n4 * 4                   # double-buffered f32 output block
                      + (n1 + n2 + n3 + n4) * 4)     # f32 intermediates
    tile, grid_b, Bp = _choose_tiling(B, tile_b, bytes_per_lane)

    x_pad = x if Bp == B else jnp.pad(x, ((0, Bp - B), (0, 0)))

    if operand_dtype is not None:
        w1, w2, w3, w4 = (w.astype(operand_dtype) for w in (w1, w2, w3, w4))

    # Biases packed into one resident (max_out, 4) f32 column array; each layer reads
    # its own (out, 1) column and broadcasts it over the batch (lane) axis.
    max_out = max(n1, n2, n3, n4)
    b_packed = jnp.stack(
        [jnp.pad(b.astype(jnp.float32), (0, max_out - b.shape[0]))
         for b in (b1, b2, b3, b4)], axis=1)          # (max_out, 4)

    # ---- fused kernel --------------------------------------------------------------
    def mlp_kernel(x_ref, w1_ref, w2_ref, w3_ref, w4_ref, b_ref, o_ref):
        def mm(w_ref, rhs, rhs_contract_dim):
            r = rhs if operand_dtype is None else rhs.astype(operand_dtype)
            # MXU matmul, f32 accumulation; result is (out_features, tile) lane-dense.
            return lax.dot_general(
                w_ref[...], r,
                dimension_numbers=(((1,), (rhs_contract_dim,)), ((), ())),
                preferred_element_type=jnp.float32)

        # x arrives in its native (tile, in) layout; contracting the last dims of W and
        # the x block yields batch-on-lanes directly (no wrapper-side transpose/HBM pass).
        h = mm(w1_ref, x_ref[...], 1)                       # (n1, tile)
        h = jnp.maximum(h + b_ref[:n1, 0:1], 0.0)

        h = mm(w2_ref, h, 0)                                # (n2, tile)
        h = jnp.maximum(h + b_ref[:n2, 1:2], 0.0)
        # TODO(synk): nn.Dropout(p=0.2) in training mode would need pltpu.prng_* masking;
        # eval-mode dropout is identity, which is what we implement.

        h = mm(w3_ref, h, 0)                                # (n3, tile)
        h = jnp.maximum(h + b_ref[:n3, 2:3], 0.0)

        h = mm(w4_ref, h, 0) + b_ref[:n4, 3:4]              # (n4, tile)
        o_ref[...] = h                                      # f32, lane-dense, unmasked

    # Weights/biases use constant index maps -> Mosaic keeps the blocks resident and
    # skips re-DMA across grid steps (no per-step descriptor work for them).
    const = lambda i: (0, 0)

    flops = 2 * Bp * (in_size * n1 + n1 * n2 + n2 * n3 + n3 * n4)
    bytes_accessed = (Bp * in_size * x_bytes + Bp * n4 * 4
                      + op_bytes * (n1 * in_size + n2 * n1 + n3 * n2 + n4 * n3)
                      + 4 * max_out * 4)

    outT = pl.pallas_call(
        mlp_kernel,
        out_shape=jax.ShapeDtypeStruct((n4, Bp), jnp.float32),
        grid_spec=pltpu.PrefetchScalarGridSpec(
            num_scalar_prefetch=0,
            grid=(grid_b,),
            in_specs=[
                pl.BlockSpec((tile, in_size), lambda i: (i, 0)),   # x, native (B, in)
                pl.BlockSpec(w1.shape, const),
                pl.BlockSpec(w2.shape, const),
                pl.BlockSpec(w3.shape, const),
                pl.BlockSpec(w4.shape, const),
                pl.BlockSpec(b_packed.shape, const),
            ],
            out_specs=pl.BlockSpec((n4, tile), lambda i: (0, i)),
        ),
        compiler_params=pltpu.CompilerParams(
            dimension_semantics=("parallel",),        # batch axis shards across TCs (v7x)
            vmem_limit_bytes=_VMEM_LIMIT_BYTES,
        ),
        cost_estimate=pl.CostEstimate(
            flops=flops, transcendentals=0, bytes_accessed=bytes_accessed),
    )(x_pad, w1, w2, w3, w4, b_packed)

    # Back to caller layout/dtype (B, out); drop batch padding. The output is tiny
    # (out_size x B), so this transpose/slice/cast is negligible wrapper work.
    return outT[:, :B].T.astype(out_dtype)


def init_mlp_params(key, input_size, hidden_size, output_size,
                    num_layers=4, decay_factor=0.5, dtype=jnp.float32):
    """Deterministic synthetic init mirroring the PyTorch layer sizes.

    Returns list of (W (out,in), bias (out,)) — same layout as nn.Linear.weight.
    """
    sizes = [(input_size, hidden_size)]
    current = hidden_size
    for _ in range(num_layers - 2):
        nxt = int(current * decay_factor)
        sizes.append((current, nxt))
        current = nxt
    sizes.append((current, output_size))

    params = []
    for (fan_in, fan_out) in sizes:
        key, kw, kb = jax.random.split(key, 3)
        bound = 1.0 / jnp.sqrt(fan_in)
        w = jax.random.uniform(kw, (fan_out, fan_in), dtype, -bound, bound)
        b = jax.random.uniform(kb, (fan_out,), dtype, -bound, bound)
        params.append((w, b))
    return params


def mlp_reference(x, params):
    """Plain-JAX reference for correctness check (weights in (out,in) layout)."""
    (w1, b1), (w2, b2), (w3, b3), (w4, b4) = params
    h = jnp.maximum(x @ w1.T + b1, 0.0)
    h = jnp.maximum(h @ w2.T + b2, 0.0)
    h = jnp.maximum(h @ w3.T + b3, 0.0)
    return h @ w4.T + b4


if __name__ == "__main__":
    key = jax.random.PRNGKey(0)
    k_x, k_p, k_x2 = jax.random.split(key, 3)

    input_size, hidden_size, output_size = 32, 64, 8
    params = init_mlp_params(k_p, input_size, hidden_size, output_size)

    # Small batch, default path (bf16 MXU operands, f32 accumulation).
    batch = 16
    x = jax.random.normal(k_x, (batch, input_size), jnp.float32)
    ref = mlp_reference(x, params)
    out = jax.block_until_ready(mlp_forward(x, params))
    assert out.shape == (batch, output_size)
    assert jnp.allclose(out, ref, atol=3e-2, rtol=3e-2), "bf16-operand path mismatch"

    # Same batch, full-f32 operands -> tight tolerance.
    out_f32 = jax.block_until_ready(mlp_forward(x, params, operand_dtype=None))
    assert jnp.allclose(out_f32, ref, atol=1e-5, rtol=1e-5), "f32 path mismatch"

    # Larger, non-aligned batch with a small tile to exercise the multi-step grid
    # (2 equalized tiles, 128-lane batch padding path), f32 operands for a tight check.
    batch2 = 300
    x2 = jax.random.normal(k_x2, (batch2, input_size), jnp.float32)
    ref2 = mlp_reference(x2, params)
    out2 = jax.block_until_ready(mlp_forward(x2, params, tile_b=256, operand_dtype=None))
    assert out2.shape == (batch2, output_size)
    assert jnp.allclose(out2, ref2, atol=1e-5, rtol=1e-5), "multi-tile path mismatch"

    print("KERNEL_OK")
</pallas_src>

<mosaic_0001>
module attributes {stable_mosaic.version = 11 : i64} {
  func.func @mlp_kernel(%arg0: i32, %arg1: memref<128x32xf32, #tpu.memory_space<vmem>>, %arg2: memref<64x32xbf16, #tpu.memory_space<vmem>>, %arg3: memref<32x64xbf16, #tpu.memory_space<vmem>>, %arg4: memref<16x32xbf16, #tpu.memory_space<vmem>>, %arg5: memref<8x16xbf16, #tpu.memory_space<vmem>>, %arg6: memref<64x4xf32, #tpu.memory_space<vmem>>, %arg7: memref<8x128xf32, #tpu.memory_space<vmem>>) attributes {dimension_semantics = [#tpu.dimension_semantics<parallel>], iteration_bounds = array<i64: 1>, scalar_prefetch = 0 : i64, scratch_operands = 0 : i64, tpu.core_type = #tpu.core_type<tc>, window_params = [{transform_indices = @transform_0, window_bounds = array<i64: 128, 32>}, {pipeline_mode = #tpu.pipeline_mode<synchronous>, transform_indices = @transform_1, window_bounds = array<i64: 64, 32>}, {pipeline_mode = #tpu.pipeline_mode<synchronous>, transform_indices = @transform_2, window_bounds = array<i64: 32, 64>}, {pipeline_mode = #tpu.pipeline_mode<synchronous>, transform_indices = @transform_3, window_bounds = array<i64: 16, 32>}, {pipeline_mode = #tpu.pipeline_mode<synchronous>, transform_indices = @transform_4, window_bounds = array<i64: 8, 16>}, {pipeline_mode = #tpu.pipeline_mode<synchronous>, transform_indices = @transform_5, window_bounds = array<i64: 64, 4>}, {transform_indices = @transform_6, window_bounds = array<i64: 8, 128>}]} {
    %c0 = arith.constant 0 : index
    %c0_0 = arith.constant 0 : index
    %0 = vector.load %arg1[%c0, %c0_0] : memref<128x32xf32, #tpu.memory_space<vmem>>, vector<128x32xf32>
    %1 = arith.truncf %0 : vector<128x32xf32> to vector<128x32xbf16>
    %c0_1 = arith.constant 0 : index
    %c0_2 = arith.constant 0 : index
    %2 = vector.load %arg2[%c0_1, %c0_2] : memref<64x32xbf16, #tpu.memory_space<vmem>>, vector<64x32xbf16>
    %cst = arith.constant dense<0.000000e+00> : vector<64x128xf32>
    %3 = tpu.matmul %2, %1, %cst {dimension_numbers = #tpu.dot_dimension_numbers<[1], [1], [0], [0], [0, 0, 1, 0], [], []>} : vector<64x32xbf16>, vector<128x32xbf16>, vector<64x128xf32> -> vector<64x128xf32>
    %c0_3 = arith.constant 0 : index
    %c0_4 = arith.constant 0 : index
    %4 = vector.load %arg6[%c0_3, %c0_4] : memref<64x4xf32, #tpu.memory_space<vmem>>, vector<64x1xf32>
    %5 = vector.broadcast %4 : vector<64x1xf32> to vector<64x128xf32>
    %6 = arith.addf %3, %5 : vector<64x128xf32>
    %cst_5 = arith.constant 0.000000e+00 : f32
    %7 = vector.broadcast %cst_5 : f32 to vector<64x128xf32>
    %8 = arith.maximumf %6, %7 : vector<64x128xf32>
    %9 = arith.truncf %8 : vector<64x128xf32> to vector<64x128xbf16>
    %c0_6 = arith.constant 0 : index
    %c0_7 = arith.constant 0 : index
    %10 = vector.load %arg3[%c0_6, %c0_7] : memref<32x64xbf16, #tpu.memory_space<vmem>>, vector<32x64xbf16>
    %cst_8 = arith.constant dense<0.000000e+00> : vector<32x128xf32>
    %11 = tpu.matmul %10, %9, %cst_8 {dimension_numbers = #tpu.dot_dimension_numbers<[1], [0], [0], [1], [0, 0, 1, 1], [], []>} : vector<32x64xbf16>, vector<64x128xbf16>, vector<32x128xf32> -> vector<32x128xf32>
    %c0_9 = arith.constant 0 : index
    %c1 = arith.constant 1 : index
    %12 = vector.load %arg6[%c0_9, %c1] : memref<64x4xf32, #tpu.memory_space<vmem>>, vector<32x1xf32>
    %13 = vector.broadcast %12 : vector<32x1xf32> to vector<32x128xf32>
    %14 = arith.addf %11, %13 : vector<32x128xf32>
    %cst_10 = arith.constant 0.000000e+00 : f32
    %15 = vector.broadcast %cst_10 : f32 to vector<32x128xf32>
    %16 = arith.maximumf %14, %15 : vector<32x128xf32>
    %17 = arith.truncf %16 : vector<32x128xf32> to vector<32x128xbf16>
    %c0_11 = arith.constant 0 : index
    %c0_12 = arith.constant 0 : index
    %18 = vector.load %arg4[%c0_11, %c0_12] : memref<16x32xbf16, #tpu.memory_space<vmem>>, vector<16x32xbf16>
    %cst_13 = arith.constant dense<0.000000e+00> : vector<16x128xf32>
    %19 = tpu.matmul %18, %17, %cst_13 {dimension_numbers = #tpu.dot_dimension_numbers<[1], [0], [0], [1], [0, 0, 1, 1], [], []>} : vector<16x32xbf16>, vector<32x128xbf16>, vector<16x128xf32> -> vector<16x128xf32>
    %c0_14 = arith.constant 0 : index
    %c2 = arith.constant 2 : index
    %20 = vector.load %arg6[%c0_14, %c2] : memref<64x4xf32, #tpu.memory_space<vmem>>, vector<16x1xf32>
    %21 = vector.broadcast %20 : vector<16x1xf32> to vector<16x128xf32>
    %22 = arith.addf %19, %21 : vector<16x128xf32>
    %cst_15 = arith.constant 0.000000e+00 : f32
    %23 = vector.broadcast %cst_15 : f32 to vector<16x128xf32>
    %24 = arith.maximumf %22, %23 : vector<16x128xf32>
    %25 = arith.truncf %24 : vector<16x128xf32> to vector<16x128xbf16>
    %c0_16 = arith.constant 0 : index
    %c0_17 = arith.constant 0 : index
    %26 = vector.load %arg5[%c0_16, %c0_17] : memref<8x16xbf16, #tpu.memory_space<vmem>>, vector<8x16xbf16>
    %cst_18 = arith.constant dense<0.000000e+00> : vector<8x128xf32>
    %27 = tpu.matmul %26, %25, %cst_18 {dimension_numbers = #tpu.dot_dimension_numbers<[1], [0], [0], [1], [0, 0, 1, 1], [], []>} : vector<8x16xbf16>, vector<16x128xbf16>, vector<8x128xf32> -> vector<8x128xf32>
    %c0_19 = arith.constant 0 : index
    %c3 = arith.constant 3 : index
    %28 = vector.load %arg6[%c0_19, %c3] : memref<64x4xf32, #tpu.memory_space<vmem>>, vector<8x1xf32>
    %29 = vector.broadcast %28 : vector<8x1xf32> to vector<8x128xf32>
    %30 = arith.addf %27, %29 : vector<8x128xf32>
    %c0_20 = arith.constant 0 : index
    %c0_21 = arith.constant 0 : index
    %31 = vector.load %arg7[%c0_20, %c0_21] : memref<8x128xf32, #tpu.memory_space<vmem>>, vector<8x128xf32>
    tpu.vector_store %arg7[%c0_20, %c0_21], %30 {strides = array<i32>} : memref<8x128xf32, #tpu.memory_space<vmem>>, vector<8x128xf32>,
    return
  }
  func.func @transform_0(%arg0: i32) -> (i32, i32) {
    %c0_i32 = arith.constant 0 : i32
    %c0_i32_0 = arith.constant 0 : i32
    return %arg0, %c0_i32 : i32, i32
  }
  func.func @transform_1(%arg0: i32) -> (i32, i32) {
    %c0_i32 = arith.constant 0 : i32
    %c0_i32_0 = arith.constant 0 : i32
    %c0_i32_1 = arith.constant 0 : i32
    return %c0_i32, %c0_i32_0 : i32, i32
  }
  func.func @transform_2(%arg0: i32) -> (i32, i32) {
    %c0_i32 = arith.constant 0 : i32
    %c0_i32_0 = arith.constant 0 : i32
    %c0_i32_1 = arith.constant 0 : i32
    return %c0_i32, %c0_i32_0 : i32, i32
  }
  func.func @transform_3(%arg0: i32) -> (i32, i32) {
    %c0_i32 = arith.constant 0 : i32
    %c0_i32_0 = arith.constant 0 : i32
    %c0_i32_1 = arith.constant 0 : i32
    return %c0_i32, %c0_i32_0 : i32, i32
  }
  func.func @transform_4(%arg0: i32) -> (i32, i32) {
    %c0_i32 = arith.constant 0 : i32
    %c0_i32_0 = arith.constant 0 : i32
    %c0_i32_1 = arith.constant 0 : i32
    return %c0_i32, %c0_i32_0 : i32, i32
  }
  func.func @transform_5(%arg0: i32) -> (i32, i32) {
    %c0_i32 = arith.constant 0 : i32
    %c0_i32_0 = arith.constant 0 : i32
    %c0_i32_1 = arith.constant 0 : i32
    return %c0_i32, %c0_i32_0 : i32, i32
  }
  func.func @transform_6(%arg0: i32) -> (i32, i32) {
    %c0_i32 = arith.constant 0 : i32
    %c0_i32_0 = arith.constant 0 : i32
    return %c0_i32, %arg0 : i32, i32
  }
}

</mosaic_0001>

<bundles_post_ra>
// kernel: mlp_forward.1
= control target key start
LH: loop header
LB: loop body
LE: loop exit
PB: predicated region body
PF: predicated region fallthrough
CT: control target
= control target key end

     0   :  { %vm124_vm0 = vcmask 261120   ;;  %v577_v3 = vmov 0   ;;  %vm276_vm1 = vcmask 523264   ;;  %v578_v46 = vmov 1   ;;  %s753_s0 = inlined_call_operand.vmem [shape: f32[128,32], index: 0, kind: input, shape index: {}]   ;;  %s754_s1 = inlined_call_operand.vmem [shape: bf16[64,32], index: 1, kind: input, shape index: {}]   ;;  %s755_s5 = inlined_call_operand.vmem [shape: f32[64,4], index: 5, kind: input, shape index: {}]   ;;  %s756_s2 = inlined_call_operand.vmem [shape: bf16[32,64], index: 2, kind: input, shape index: {}]   ;;  %s757_s3 = inlined_call_operand.vmem [shape: bf16[16,32], index: 3, kind: input, shape index: {}]   ;;  %s758_s4 = inlined_call_operand.vmem [shape: bf16[8,16], index: 4, kind: input, shape index: {}]   ;;  %s759_s6 = inlined_call_operand.vmem [shape: f32[8,128], index: 6, kind: output, shape index: {}]  }
   0x1   :  { %v38_v0 = vld [vmem:[%s753_s0 + $0x70] sm:$0xff]  ;;  %v39_v1 = vld [vmem:[%s753_s0 + $0x78] sm:$0xff]  ;;  %v36_v2 = vld [vmem:[%s753_s0 + $0x60] sm:$0xff]  ;;  %562 = vset.pattern.permute.xlu0 %v577_v3  ;;  %563 = vset.pattern.permute.xlu1 %v577_v3  ;;  %vm580_vm2 = vmmov 0   ;;  %vm411_vm3 = vcmask 130048  }
   0x2   :  { %v47_v4 = vpack.c.bf16 %v39_v1, %v38_v0  ;;  %v37_v5 = vld [vmem:[%s753_s0 + $0x68] sm:$0xff]  ;;  %v34_v8 = vld [vmem:[%s753_s0 + $0x50] sm:$0xff]  ;;  %v35_v9 = vld [vmem:[%s753_s0 + $0x58] sm:$0xff] }
   0x3   :  { %v46_v6 = vpack.c.bf16 %v37_v5, %v36_v2  ;;  %v570_v10 = vld [vmem:[%s754_s1] sm:$0xff]   ;;  %v45_v12 = vpack.c.bf16 %v35_v9, %v34_v8  ;;  %v62_v13 = vld [vmem:[%s755_s5 + $0x30] sm:$0xff]  ;;  %v63_v15 = vld [vmem:[%s755_s5 + $0x38] sm:$0xff] }
   0x4   :  { %548 = vmatprep.subr.msk.bf16.mxu0 %vm124_vm0, %v47_v4  ;;  %v159_v7 = vsel %vm124_vm0, %v47_v4, 0  ;;  %514 = vmatprep.mubr.msk.bf16.mxu0 %vm124_vm0, %v570_v10  ;;  %v60_v14 = vld [vmem:[%s755_s5 + $0x20] sm:$0xff]  ;;  %v61_v16 = vld [vmem:[%s755_s5 + $0x28] sm:$0xff]  ;;  %v58_v19 = vld [vmem:[%s755_s5 + $0x10] sm:$0xff] }
   0x5   :  { %499 = vmatpush3.bf16.xpose.msra.mxu0 %v159_v7  ;;  %v156_v11 = vsel %vm124_vm0, %v46_v6, 0  ;;  %96 = vperm.xlu0 %562, %v62_v13   ;;  %v32_v17 = vld [vmem:[%s753_s0 + $0x40] sm:$0xff]  ;;  %v33_v18 = vld [vmem:[%s753_s0 + $0x48] sm:$0xff]  ;;  %v59_v20 = vld [vmem:[%s755_s5 + $0x18] sm:$0xff]  ;;  %v153_v21 = vsel %vm124_vm0, %v45_v12, 0 }
   0x6   :  { %549 = vmatprep.subr.msk.bf16.mxu0 %vm124_vm0, %v46_v6  ;;  %86 = vperm.xlu1 %563, %v60_v14   ;;  %v44_v22 = vpack.c.bf16 %v33_v18, %v32_v17  ;;  %v673_v23 = vld [vmem:[%s755_s5] sm:$0xff]  ;;  %v678_v24 = vld [vmem:[%s755_s5 + $0x8] sm:$0xff]  ;;  %v30_v25 = vld [vmem:[%s753_s0 + $0x30] sm:$0xff] }
   0x7   :  { %v31_v26 = vld [vmem:[%s753_s0 + $0x38] sm:$0xff]  ;;  %v28_v29 = vld [vmem:[%s753_s0 + $0x20] sm:$0xff]  ;;  %v29_v30 = vld [vmem:[%s753_s0 + $0x28] sm:$0xff] }
   0x8   :  { %v150_v27 = vsel %vm124_vm0, %v44_v22, 0  ;;  %v43_v28 = vpack.c.bf16 %v31_v26, %v30_v25  ;;  %v42_v32 = vpack.c.bf16 %v29_v30, %v28_v29  ;;  %v26_v33 = vld [vmem:[%s753_s0 + $0x10] sm:$0xff]  ;;  %v27_v34 = vld [vmem:[%s753_s0 + $0x18] sm:$0xff]  ;;  %v24_v37 = vld [vmem:[%s753_s0] sm:$0xff] }
   0x9   :  { %101 = vperm.xlu0 %562, %v63_v15   ;;  %v41_v36 = vpack.c.bf16 %v27_v34, %v26_v33  ;;  %v25_v38 = vld [vmem:[%s753_s0 + $0x8] sm:$0xff]  ;;  %v572_v43 = vld [vmem:[%s754_s1 + $0x10] sm:$0xff]   ;;  %v573_v44 = vld [vmem:[%s754_s1 + $0x18] sm:$0xff]  }
   0xa   :  { %91 = vperm.xlu1 %563, %v61_v16   ;;  %v147_v31 = vsel %vm124_vm0, %v43_v28, 0  ;;  %v144_v35 = vsel %vm124_vm0, %v42_v32, 0  ;;  %v40_v40 = vpack.c.bf16 %v25_v38, %v24_v37  ;;  %v571_v42 = vld [vmem:[%s754_s1 + $0x8] sm:$0xff]   ;;  %v574_v45 = vld [vmem:[%s756_s2] sm:$0xff]  }
   0xb   :  { %v141_v39 = vsel %vm124_vm0, %v41_v36, 0  ;;  %530 = vmatprep.mubr.msk.bf16.mxu1 %vm276_vm1, %v574_v45 }
   0xc   :  { %v138_v41 = vsel %vm124_vm0, %v40_v40, 0 }
   0xd   :  { %501 = vmatpush3.bf16.xpose.msra.mxu0 %v156_v11  ;;  %76 = vperm.xlu0 %562, %v58_v19  }
   0xe   :  { %550 = vmatprep.subr.msk.bf16.mxu0 %vm124_vm0, %v45_v12  ;;  %81 = vperm.xlu1 %563, %v59_v20  }
  0x11   :  { %66 = vperm.xlu0 %562, %v673_v23  }
  0x12   :  { %71 = vperm.xlu1 %563, %v678_v24  }
  0x15   :  { %503 = vmatpush3.bf16.xpose.msra.mxu0 %v153_v21  ;;  %564 = vset.pattern.permute.xlu0 %v578_v46  ;;  %v581_v21 = vmov 2  }
  0x16   :  { %551 = vmatprep.subr.msk.bf16.mxu0 %vm124_vm0, %v44_v22  ;;  %565 = vset.pattern.permute.xlu1 %v578_v46 }
  0x17   :  { %263 = vperm.xlu1 %565, %v59_v20   ;;  %258 = vperm.xlu0 %564, %v58_v19   ;;  %v575_v19 = vld [vmem:[%s756_s2 + $0x8] sm:$0xff]   ;;  %v579_v20 = vmov 0.0  }
  0x1b   :  { %248 = vperm.xlu1 %565, %v673_v23   ;;  %253 = vperm.xlu0 %564, %v678_v24  }
  0x1d   :  { %505 = vmatpush3.bf16.xpose.msra.mxu0 %v150_v27 }
  0x1e   :  { %552 = vmatprep.subr.msk.bf16.mxu0 %vm124_vm0, %v43_v28 }
  0x1f   :  { %566 = vset.pattern.permute.xlu1 %v581_v21  ;;  %567 = vset.pattern.permute.xlu0 %v581_v21 }
  0x20   :  { %344 = vperm.xlu1 %566, %v673_v23   ;;  %349 = vperm.xlu0 %567, %v678_v24  }
  0x25   :  { %507 = vmatpush3.bf16.xpose.msra.mxu0 %v147_v31 }
  0x26   :  { %553 = vmatprep.subr.msk.bf16.mxu0 %vm124_vm0, %v42_v32 }
  0x2d   :  { %509 = vmatpush3.bf16.xpose.msra.mxu0 %v144_v35 }
  0x2e   :  { %554 = vmatprep.subr.msk.bf16.mxu0 %vm124_vm0, %v41_v36 }
  0x35   :  { %511 = vmatpush3.bf16.xpose.msra.mxu0 %v141_v39 }
  0x36   :  { %555 = vmatprep.subr.msk.bf16.mxu0 %vm124_vm0, %v40_v40 }
  0x3d   :  { %513 = vmatpush3.bf16.xpose.msra.mxu0 %v138_v41  ;;  %v576_v41 = vld [vmem:[%s757_s3] sm:$0xff]  }
  0x44   :  { %515 = vmatmul.mubr.msk.bf16.vlgmr.msra.gmra.mxu0 %vm124_vm0, %v571_v42  ;;  %v582_v42 = vmov 3  }
  0x45   :  { %518 = vmatprep.mubr.msk.bf16.mxu0 %vm124_vm0, %v572_v43  ;;  %568 = vset.pattern.permute.xlu1 %v582_v42 }
  0x46   :  { %569 = vset.pattern.permute.xlu0 %v582_v42  ;;  %408 = vperm.xlu1 %568, %v673_v23  }
  0x4c   :  { %519 = vmatmul.mubr.msk.bf16.gmra.mxu0 %vm124_vm0, %v573_v44 }
  0x80   :  { %v97_v48 = vpop.permute.xlu0 %96 }
  0x81   :  { %v87_v47 = vpop.permute.xlu1 %86 }
  0x84   :  { %v102_v53 = vpop.permute.xlu0 %101 }
  0x85   :  { %v92_v51 = vpop.permute.xlu1 %91 }
  0x88   :  { %v77_v59 = vpop.permute.xlu0 %76 }
  0x89   :  { %v82_v56 = vpop.permute.xlu1 %81 }
  0x8c   :  { %v67_v9 = vpop.permute.xlu0 %66 }
  0x8d   :  { %v72_v4 = vpop.permute.xlu1 %71 }
  0x92   :  { %v264_v22 = vpop.permute.xlu1 %263  ;;  %v259_v25 = vpop.permute.xlu0 %258 }
  0x96   :  { %v249_v29 = vpop.permute.xlu1 %248  ;;  %v254_v32 = vpop.permute.xlu0 %253 }
  0x9b   :  { %v345_v43 = vpop.permute.xlu1 %344  ;;  %v350_v46 = vpop.permute.xlu0 %349 }
 0x104   :  { %v516_v49 = vpop.f32.mrf.mxu0 }
 0x105   :  { %v204_v5 = vadd.f32 %v516_v49, %v77_v59 }
 0x106   :  { %v195_v50 = vpop.f32.mrf.mxu0 }
 0x107   :  { %v228_v13 = vmax.f32 %v204_v5, 0.0  ;;  %v196_v14 = vadd.f32 %v195_v50, %v67_v9 }
 0x108   :  { %v517_v52 = vpop.f32.mrf.mxu0 }
 0x109   :  { %v207_v0 = vadd.f32 %v517_v52, %v82_v56  ;;  %v226_v17 = vmax.f32 %v196_v14, 0.0 }
 0x10a   :  { %v198_v54 = vpop.f32.mrf.mxu0 }
 0x10b   :  { %v229_v10 = vmax.f32 %v207_v0, 0.0  ;;  %v199_v11 = vadd.f32 %v198_v54, %v72_v4  ;;  %v404_v54 = vld [vmem:[%s758_s4] sm:$0xf] }
 0x10c   :  { %v520_v55 = vpop.f32.mrf.mxu0 }
 0x10d   :  { %v220_v58 = vadd.f32 %v520_v55, %v97_v48  ;;  %v235_v15 = vpack.c.bf16 %v229_v10, %v228_v13  ;;  %v227_v16 = vmax.f32 %v199_v11, 0.0  ;;  %v409_v55 = vpop.permute.xlu1 %408 }
 0x10e   :  { %v211_v57 = vpop.f32.mrf.mxu0 }
 0x10f   :  { %v212_v61 = vadd.f32 %v211_v57, %v87_v47  ;;  %v232_v1 = vmax.f32 %v220_v58, 0.0  ;;  %v234_v18 = vpack.c.bf16 %v227_v16, %v226_v17 }
 0x110   :  { %v521_v60 = vpop.f32.mrf.mxu0 }
 0x111   :  { %v223_v62 = vadd.f32 %v521_v60, %v102_v53  ;;  %v230_v6 = vmax.f32 %v212_v61, 0.0 }
 0x112   :  { %v214_v63 = vpop.f32.mrf.mxu0 }
 0x113   :  { %v233_v2 = vmax.f32 %v223_v62, 0.0  ;;  %v215_v3 = vadd.f32 %v214_v63, %v92_v51 }
 0x115   :  { %v231_v7 = vmax.f32 %v215_v3, 0.0  ;;  %v237_v8 = vpack.c.bf16 %v233_v2, %v232_v1 }
 0x117   :  { %v236_v12 = vpack.c.bf16 %v231_v7, %v230_v6  ;;  %522 = vmatprep.subr.bf16.mxu1 %v237_v8 }
 0x118   :  { %523 = vmatpush3.bf16.msra.mxu1 %v237_v8 }
 0x119   :  { %524 = vmatprep.subr.bf16.mxu1 %v236_v12 }
 0x11c   :  { %525 = vmatpush3.bf16.msra.mxu1 %v236_v12 }
 0x11d   :  { %526 = vmatprep.subr.bf16.mxu1 %v235_v15 }
 0x120   :  { %527 = vmatpush3.bf16.msra.mxu1 %v235_v15 }
 0x121   :  { %528 = vmatprep.subr.bf16.mxu1 %v234_v18 }
 0x124   :  { %529 = vmatpush3.bf16.msra.mxu1 %v234_v18 }
 0x125   :  { %534 = vmatprep.subr.bf16.mxu1 %v579_v20 }
 0x127   :  { %531 = vmatmul.mubr.msk.bf16.vlgmr.msra.gmra.mxu1 %vm276_vm1, %v575_v19 }
 0x128   :  { %538 = vmatprep.mubr.msk.bf16.mxu1 %vm580_vm2, %v579_v20 }
 0x1e7   :  { %v532_v26 = vpop.f32.mrf.mxu1 }
 0x1e8   :  { %v326_v28 = vadd.f32 %v532_v26, %v259_v25 }
 0x1e9   :  { %v317_v27 = vpop.f32.mrf.mxu1 }
 0x1ea   :  { %v334_v34 = vmax.f32 %v326_v28, 0.0  ;;  %v318_v35 = vadd.f32 %v317_v27, %v249_v29 }
 0x1eb   :  { %v533_v30 = vpop.f32.mrf.mxu1 }
 0x1ec   :  { %v329_v31 = vadd.f32 %v533_v30, %v264_v22  ;;  %v332_v40 = vmax.f32 %v318_v35, 0.0 }
 0x1ed   :  { %v320_v33 = vpop.f32.mrf.mxu1 }
 0x1ee   :  { %v335_v36 = vmax.f32 %v329_v31, 0.0  ;;  %v321_v37 = vadd.f32 %v320_v33, %v254_v32 }
 0x1f0   :  { %v337_v38 = vpack.c.bf16 %v335_v36, %v334_v34  ;;  %v333_v39 = vmax.f32 %v321_v37, 0.0 }
 0x1f2   :  { %535 = vmatpush3.bf16.msra.mxu1 %v337_v38  ;;  %v336_v24 = vpack.c.bf16 %v333_v39, %v332_v40 }
 0x1f3   :  { %536 = vmatprep.subr.bf16.mxu1 %v579_v20 }
 0x1f6   :  { %537 = vmatpush3.bf16.msra.mxu1 %v336_v24 }
 0x1f7   :  { %542 = vmatprep.subr.bf16.mxu1 %v579_v20 }
 0x1f9   :  { %539 = vmatmul.mubr.msk.bf16.vlgmr.msra.gmra.mxu1 %vm124_vm0, %v576_v41 }
 0x1fa   :  { %544 = vmatprep.mubr.msk.bf16.mxu1 %vm580_vm2, %v579_v20 }
 0x2b9   :  { %v394_v44 = vpop.f32.mrf.mxu1 }
 0x2ba   :  { %v395_v47 = vadd.f32 %v394_v44, %v345_v43 }
 0x2bb   :  { %v540_v45 = vpop.f32.mrf.mxu1 }
 0x2bc   :  { %v401_v51 = vmax.f32 %v395_v47, 0.0 }
 0x2bd   :  { %v397_v48 = vpop.f32.mrf.mxu1 }
 0x2be   :  { %v398_v49 = vadd.f32 %v397_v48, %v350_v46 }
 0x2bf   :  { %v541_v50 = vpop.f32.mrf.mxu1 }
 0x2c0   :  { %v402_v52 = vmax.f32 %v398_v49, 0.0 }
 0x2c2   :  { %v403_v53 = vpack.c.bf16 %v402_v52, %v401_v51 }
 0x2c4   :  { %543 = vmatpush3.bf16.msra.mxu1 %v403_v53 }
 0x2c7   :  { %545 = vmatmul.mubr.msk.bf16.vlgmr.msra.gmra.mxu1 %vm411_vm3, %v404_v54 }
 0x387   :  { %v449_v23 = vpop.f32.mrf.mxu1 }
 0x388   :  { %v450_v56 = vadd.f32 %v449_v23, %v409_v55 }
 0x389   :  { %v546_v57 = vpop.f32.mrf.mxu1 }
 0x38a   :  { %455 = vst [vmem:[%s759_s6] sm:$0xff] %v450_v56 }
 0x38b   :  { %v452_v58 = vpop.f32.mrf.mxu1 }
 0x38d   :  { %v547_v59 = vpop.f32.mrf.mxu1 }

</bundles_post_ra>
